<compile_context>
chip_gen: v7x
topology: tpu7x:2x2x1
jax: 0.10.0
libtpu: 0.0.40
codegen_flags: <defaults>
</compile_context>

<pallas_src>
import jax
import jax.numpy as jnp
from jax.experimental import pallas as pl
from jax.experimental.pallas import tpu as pltpu

LANES = 128


def demo_kernel(params_ref, x_ref, y_ref):
    # params (SMEM, f32[8]): [conv_w, conv_b, w00, w01, w10, w11, b0, b1]
    cw = params_ref[0]
    cb = params_ref[1]
    w00 = params_ref[2]
    w01 = params_ref[3]
    w10 = params_ref[4]
    w11 = params_ref[5]
    b0 = params_ref[6]
    b1 = params_ref[7]

    # (block_rows, 128) tile; even lanes = feature 0, odd lanes = feature 1.
    x = x_ref[...]

    # Conv2d(1,1,k=1) == elementwise scale + bias, then ReLU (pure VPU).
    h = jnp.maximum(x * cw + cb, 0.0)

    lane = jax.lax.broadcasted_iota(jnp.int32, x.shape, 1)
    is_f0 = (lane & 1) == 0

    # Pair partner h[i ^ 1]: two lane rotations on the XLU + one select.
    # Pairs never straddle a 128-lane row (128 is even), and the circular
    # wrap-around lanes are never selected.
    nxt = pltpu.roll(h, LANES - 1, 1)   # h[(i + 1) % 128]
    prv = pltpu.roll(h, 1, 1)           # h[(i - 1) % 128]
    h_sw = jnp.where(is_f0, nxt, prv)

    # Linear(2, 2): y = h @ W^T + b, evaluated per lane (no MXU needed).
    w_self = jnp.where(is_f0, w00, w11)
    w_other = jnp.where(is_f0, w01, w10)
    bias = jnp.where(is_f0, b0, b1)
    y_ref[...] = w_self * h + w_other * h_sw + bias


def demo_model_forward(x_nchw, conv_w, conv_b, fc_w, fc_b, *, max_block_rows=1024):
    """x_nchw: (N, 1, H, 2) f32. Returns (N, 1, H, 2) f32."""
    N, C, H, W = x_nchw.shape
    assert C == 1, "Conv2d(in_channels=1) => single channel"
    assert W == 2, "Linear(2, 2) => last dim must be 2"

    total = N * C * H * W  # flattened element count (W fastest => lane parity = feature)
    m_needed = pl.cdiv(total, LANES)
    block_rows = min(max_block_rows, max(8, pl.cdiv(m_needed, 8) * 8))
    m = pl.cdiv(m_needed, block_rows) * block_rows
    total_pad = m * LANES

    flat = x_nchw.astype(jnp.float32).reshape(total)
    if total_pad != total:
        flat = jnp.pad(flat, (0, total_pad - total))
    x2 = flat.reshape(m, LANES)  # lane-dense, features interleaved on lanes

    # Pack all 8 parameters into one SMEM scalar array.
    params = jnp.concatenate(
        [
            conv_w.reshape(-1)[:1],  # cw
            conv_b.reshape(-1)[:1],  # cb
            fc_w.reshape(-1),        # w00, w01, w10, w11  (PyTorch (out, in))
            fc_b.reshape(-1),        # b0, b1
        ]
    ).astype(jnp.float32)

    blk = pl.BlockSpec((block_rows, LANES), lambda i: (i, 0))
    y2 = pl.pallas_call(
        demo_kernel,
        out_shape=jax.ShapeDtypeStruct((m, LANES), jnp.float32),
        grid=(m // block_rows,),
        in_specs=[
            pl.BlockSpec(memory_space=pltpu.MemorySpace.SMEM),  # params (scalars)
            blk,                                                # x plane
        ],
        out_specs=blk,
        compiler_params=pltpu.CompilerParams(
            dimension_semantics=("parallel",),
            vmem_limit_bytes=32 * 1024 * 1024,
        ),
    )(params, x2)

    y = y2.reshape(total_pad)
    if total_pad != total:
        y = y[:total]
    return y.reshape(N, C, H, W)


def _reference(x, conv_w, conv_b, fc_w, fc_b):
    h = jnp.maximum(x * conv_w[0, 0, 0, 0] + conv_b[0], 0.0)
    return jnp.einsum("nchw,ow->ncho", h, fc_w) + fc_b


if __name__ == "__main__":
    key = jax.random.PRNGKey(0)
    k_x, k_cw, k_cb, k_fw, k_fb = jax.random.split(key, 5)

    # Small shapes consistent with the module: Linear(2,2) forces last dim = 2,
    # Conv2d(in=1) forces channels = 1.
    N, C, H, W = 2, 1, 16, 2
    x = jax.random.normal(k_x, (N, C, H, W), dtype=jnp.float32)

    # Deterministic synthetic parameters (not a checkpoint load).
    conv_w = jax.random.normal(k_cw, (1, 1, 1, 1), dtype=jnp.float32)
    conv_b = jax.random.normal(k_cb, (1,), dtype=jnp.float32)
    fc_w = jax.random.normal(k_fw, (2, 2), dtype=jnp.float32)
    fc_b = jax.random.normal(k_fb, (2,), dtype=jnp.float32)

    out = demo_model_forward(x, conv_w, conv_b, fc_w, fc_b)
    jax.block_until_ready(out)
    ref = _reference(x, conv_w, conv_b, fc_w, fc_b)
    assert out.shape == ref.shape
    assert jnp.allclose(out, ref, atol=1e-5, rtol=1e-5), "mismatch vs reference"

    # Second check: shape that exercises a multi-step, pipelined grid
    # (8 grid steps with block_rows=8) while staying small.
    x_big = jax.random.normal(k_x, (2, 1, 2048, 2), dtype=jnp.float32)
    out_big = demo_model_forward(x_big, conv_w, conv_b, fc_w, fc_b, max_block_rows=8)
    jax.block_until_ready(out_big)
    ref_big = _reference(x_big, conv_w, conv_b, fc_w, fc_b)
    assert jnp.allclose(out_big, ref_big, atol=1e-5, rtol=1e-5), "mismatch (gridded)"

    print("KERNEL_OK")
</pallas_src>

<mosaic_0001>
module attributes {stable_mosaic.version = 11 : i64} {
  func.func @demo_kernel(%arg0: i32, %arg1: memref<8xf32, #tpu.memory_space<smem>>, %arg2: memref<8x128xf32, #tpu.memory_space<vmem>>, %arg3: memref<8x128xf32, #tpu.memory_space<vmem>>) attributes {dimension_semantics = [#tpu.dimension_semantics<parallel>], iteration_bounds = array<i64: 1>, scalar_prefetch = 0 : i64, scratch_operands = 0 : i64, tpu.core_type = #tpu.core_type<tc>, window_params = [{transform_indices = @transform_0, window_bounds = array<i64: 8>}, {transform_indices = @transform_1, window_bounds = array<i64: 8, 128>}, {transform_indices = @transform_2, window_bounds = array<i64: 8, 128>}]} {
    %c0 = arith.constant 0 : index
    %0 = memref.load %arg1[%c0] : memref<8xf32, #tpu.memory_space<smem>>
    %c1 = arith.constant 1 : index
    %1 = memref.load %arg1[%c1] : memref<8xf32, #tpu.memory_space<smem>>
    %c2 = arith.constant 2 : index
    %2 = memref.load %arg1[%c2] : memref<8xf32, #tpu.memory_space<smem>>
    %c3 = arith.constant 3 : index
    %3 = memref.load %arg1[%c3] : memref<8xf32, #tpu.memory_space<smem>>
    %c4 = arith.constant 4 : index
    %4 = memref.load %arg1[%c4] : memref<8xf32, #tpu.memory_space<smem>>
    %c5 = arith.constant 5 : index
    %5 = memref.load %arg1[%c5] : memref<8xf32, #tpu.memory_space<smem>>
    %c6 = arith.constant 6 : index
    %6 = memref.load %arg1[%c6] : memref<8xf32, #tpu.memory_space<smem>>
    %c7 = arith.constant 7 : index
    %7 = memref.load %arg1[%c7] : memref<8xf32, #tpu.memory_space<smem>>
    %c0_0 = arith.constant 0 : index
    %c0_1 = arith.constant 0 : index
    %8 = vector.load %arg2[%c0_0, %c0_1] : memref<8x128xf32, #tpu.memory_space<vmem>>, vector<8x128xf32>
    %9 = vector.broadcast %0 : f32 to vector<8x128xf32>
    %10 = arith.mulf %8, %9 : vector<8x128xf32>
    %11 = vector.broadcast %1 : f32 to vector<8x128xf32>
    %12 = arith.addf %10, %11 : vector<8x128xf32>
    %cst = arith.constant 0.000000e+00 : f32
    %13 = vector.broadcast %cst : f32 to vector<8x128xf32>
    %14 = arith.maximumf %12, %13 : vector<8x128xf32>
    %15 = tpu.iota {dimensions = array<i32: 1>} : vector<8x128xi32>
    %c1_i32 = arith.constant 1 : i32
    %16 = vector.broadcast %c1_i32 : i32 to vector<8x128xi32>
    %17 = arith.andi %15, %16 : vector<8x128xi32>
    %c0_i32 = arith.constant 0 : i32
    %18 = vector.broadcast %c0_i32 : i32 to vector<8x128xi32>
    %19 = arith.cmpi eq, %17, %18 : vector<8x128xi32>
    %c127_i32 = arith.constant 127 : i32
    %20 = tpu.dynamic_rotate %14 by %c127_i32 dim 1 : vector<8x128xf32>, i32 -> vector<8x128xf32>
    %c1_i32_2 = arith.constant 1 : i32
    %21 = tpu.dynamic_rotate %14 by %c1_i32_2 dim 1 : vector<8x128xf32>, i32 -> vector<8x128xf32>
    %22 = arith.select %19, %20, %21 : vector<8x128xi1>, vector<8x128xf32>
    %23 = vector.broadcast %2 : f32 to vector<8x128xf32>
    %24 = vector.broadcast %5 : f32 to vector<8x128xf32>
    %25 = arith.select %19, %23, %24 : vector<8x128xi1>, vector<8x128xf32>
    %26 = vector.broadcast %3 : f32 to vector<8x128xf32>
    %27 = vector.broadcast %4 : f32 to vector<8x128xf32>
    %28 = arith.select %19, %26, %27 : vector<8x128xi1>, vector<8x128xf32>
    %29 = vector.broadcast %6 : f32 to vector<8x128xf32>
    %30 = vector.broadcast %7 : f32 to vector<8x128xf32>
    %31 = arith.select %19, %29, %30 : vector<8x128xi1>, vector<8x128xf32>
    %32 = arith.mulf %25, %14 : vector<8x128xf32>
    %33 = arith.mulf %28, %22 : vector<8x128xf32>
    %34 = arith.addf %32, %33 : vector<8x128xf32>
    %35 = arith.addf %34, %31 : vector<8x128xf32>
    %c0_3 = arith.constant 0 : index
    %c0_4 = arith.constant 0 : index
    %36 = vector.load %arg3[%c0_3, %c0_4] : memref<8x128xf32, #tpu.memory_space<vmem>>, vector<8x128xf32>
    tpu.vector_store %arg3[%c0_3, %c0_4], %35 {strides = array<i32>} : memref<8x128xf32, #tpu.memory_space<vmem>>, vector<8x128xf32>,
    return
  }
  func.func @transform_0(%arg0: i32) -> i32 {
    %c0_i32 = arith.constant 0 : i32
    %c0_i32_0 = arith.constant 0 : i32
    return %c0_i32 : i32
  }
  func.func @transform_1(%arg0: i32) -> (i32, i32) {
    %c0_i32 = arith.constant 0 : i32
    %c0_i32_0 = arith.constant 0 : i32
    return %arg0, %c0_i32 : i32, i32
  }
  func.func @transform_2(%arg0: i32) -> (i32, i32) {
    %c0_i32 = arith.constant 0 : i32
    %c0_i32_0 = arith.constant 0 : i32
    return %arg0, %c0_i32 : i32, i32
  }
}

</mosaic_0001>

<bundles_post_ra>
// kernel: tpu_custom_call.1
= control target key start
LH: loop header
LB: loop body
LE: loop exit
PB: predicated region body
PF: predicated region fallthrough
CT: control target
= control target key end

     0   :  { %7 = vsyncpa [#allocation5], 0  ;;  %s216_s0 = inlined_call_operand.hbm [shape: f32[8], index: 0, kind: input, shape index: {}]   ;;  %s217_s1 = inlined_call_operand.hbm [shape: f32[8,128], index: 1, kind: input, shape index: {}]   ;;  %s218_s2 = inlined_call_operand.hbm [shape: f32[8,128], index: 2, kind: output, shape index: {}]  }
   0x1   :  { %8 = vsyncpa [#allocation3], 0 }
   0x2   :  { %9 = vsyncpa [#allocation4], 0  ;;  %s100_s11 = scalar_lea.hbm %s216_s0, 16 }
   0x3   :  { %p101_p0 = scmp.ne.s32.totalorder %s216_s0, %s100_s11  ;;  %p104_p1 = scmp.lt.u32.totalorder %s100_s11, %s216_s0 }
   0x5   :  { %p106_p2 = pnand %p104_p1, %p101_p0 }
   0x7   :  { %109 = shalt.err (!%p106_p2)
}
   0x8   :  { %s160_s16 = smov [#allocation2]   ;;  %s161_s19 = smov [#allocation6]  }
   0x9   :  { %17 = dma.hbm_to_smem %s216_s0, 16, %s160_s16, [#allocation5]  }
   0xa   :  { %s24_s20 = sshll.u32 %s161_s19, 4  ;;  %s110_s23 = scalar_lea.hbm %s217_s1, 128  ;;  %s25_s20 = int_to_ptr.vmem [resolvable:$true] %s24_s20 }
   0xb   :  { %p111_p3 = scmp.ne.s32.totalorder %s217_s1, %s110_s23  ;;  %p114_p4 = scmp.lt.u32.totalorder %s110_s23, %s217_s1 }
   0xd   :  { %p116_p5 = pnand %p114_p4, %p111_p3 }
   0xf   :  { %119 = shalt.err (!%p116_p5)
}
  0x10   :  { %s120_s28 = scalar_lea.vmem %s25_s20, 128  ;;  %p125_p7 = scmp.lt.s32.totalorder %s25_s20, %s25_s20 }
  0x11   :  { %p121_p6 = scmp.ne.s32.totalorder %s25_s20, %s120_s28  ;;  %p126_p8 = scmp.lt.s32.totalorder %s120_s28, %s120_s28 }
  0x13   :  { %p127_p9 = por %p126_p8, %p125_p7 }
  0x15   :  { %p128_p10 = pnand %p127_p9, %p121_p6 }
  0x17   :  { %131 = shalt.err (!%p128_p10)
}
  0x18   :  { %27 = dma.hbm_to_vmem [thread:$0]  %s217_s1, 128, %s25_s20, [#allocation3]  }
  0x19   :  { %154 = dma.done.wait [#allocation5], 16  }
  0x1a   :  { %155 = vsyncadd [#allocation5], 4294967280 }
  0x1b   :  { %156 = dma.done.wait [#allocation3], 128  }
  0x1c   :  { %157 = vsyncadd [#allocation3], 4294967168 }
  0x1d   :  { %34 = sfence }
  0x1e   :  { %s35_s30 = sld [smem:[#allocation2]]  ;;  %s88_s3 = sld [smem:[#allocation2 + $0x1]]  ;;  %v43_v0 = vld [vmem:[#allocation6] sm:$0xff]  ;;  %v49_v6 = vlaneseq }
  0x1f   :  { %s162_s4 = smov 127   ;;  %s163_s5 = smov 1  }
  0x20   :  { %v50_v7 = vand.u32 127, %v49_v6  ;;  %s89_s1 = sld [smem:[#allocation2 + $0x2]]  ;;  %s92_s6 = sld [smem:[#allocation2 + $0x5]] }
  0x21   :  { %s90_s7 = sld [smem:[#allocation2 + $0x3]]  ;;  %s91_s8 = sld [smem:[#allocation2 + $0x4]] }
  0x22   :  { %v51_v8 = vand.u32 1, %v50_v7  ;;  %s93_s9 = sld [smem:[#allocation2 + $0x6]]  ;;  %s94_s10 = sld [smem:[#allocation2 + $0x7]] }
  0x23   :  { %s164_s11 = smov [#allocation7]  }
  0x24   :  { %v44_v1 = vstv %s35_s30  ;;  %v46_v2 = vstv %s88_s3  ;;  %vm52_vm0 = vcmp.eq.s32.totalorder %v51_v8, 0  ;;  %s78_s12 = sshll.u32 %s164_s11, 4  ;;  %s79_s12 = int_to_ptr.vmem [resolvable:$true] %s78_s12 }
  0x25   :  { %v45_v3 = vmul.f32 %v44_v1, %v43_v0  ;;  %s132_s13 = scalar_lea.vmem %s79_s12, 128  ;;  %p137_p12 = scmp.lt.s32.totalorder %s79_s12, %s79_s12 }
  0x26   :  { %v58_v9 = vstv %s89_s1  ;;  %v59_v10 = vstv %s92_s6  ;;  %p133_p11 = scmp.ne.s32.totalorder %s79_s12, %s132_s13  ;;  %p138_p13 = scmp.lt.s32.totalorder %s132_s13, %s132_s13 }
  0x27   :  { %v47_v4 = vadd.f32 %v46_v2, %v45_v3  ;;  %v61_v12 = vstv %s90_s7  ;;  %v62_v13 = vstv %s91_s8  ;;  %v60_v14 = vsel %vm52_vm0, %v58_v9, %v59_v10 }
  0x28   :  { %v63_v15 = vsel %vm52_vm0, %v61_v12, %v62_v13  ;;  %v64_v17 = vstv %s93_s9  ;;  %v65_v18 = vstv %s94_s10  ;;  %p139_p0 = por %p138_p13, %p137_p12 }
  0x29   :  { %v48_v5 = vmax.f32 %v47_v4, 0.0  ;;  %v66_v22 = vsel %vm52_vm0, %v64_v17, %v65_v18 }
  0x2a   :  { %p140_p1 = pnand %p139_p0, %p133_p11 }
  0x2b   :  { %53 = vrot.lane.b32.xlu0 %v48_v5, %s162_s4  ;;  %v67_v19 = vmul.f32 %v60_v14, %v48_v5 }
  0x2f   :  { %55 = vrot.lane.b32.xlu0 %v48_v5, %s163_s5 }
  0x9d   :  { %v54_v11 = vpop.permute.xlu0 %53 }
  0xa1   :  { %v56_v16 = vpop.permute.xlu0 %55 }
  0xa2   :  { %v57_v20 = vsel %vm52_vm0, %v54_v11, %v56_v16 }
  0xa3   :  { %v68_v21 = vmul.f32 %v63_v15, %v57_v20 }
  0xa5   :  { %v69_v23 = vadd.f32 %v68_v21, %v67_v19 }
  0xa7   :  { %v70_v24 = vadd.f32 %v69_v23, %v66_v22 }
  0xa9   :  { %71 = vst [vmem:[#allocation7] sm:$0xff] %v70_v24 }
  0xaa   :  { %143 = shalt.err (!%p140_p1)
}
  0xab   :  { %s144_s16 = scalar_lea.hbm %s218_s2, 128 }
  0xac   :  { %p145_p2 = scmp.ne.s32.totalorder %s218_s2, %s144_s16  ;;  %p148_p3 = scmp.lt.u32.totalorder %s144_s16, %s218_s2 }
  0xae   :  { %p150_p4 = pnand %p148_p3, %p145_p2 }
  0xb0   :  { %153 = shalt.err (!%p150_p4)
}
  0xb1   :  { %81 = dma.vmem_to_hbm [thread:$0]  %s79_s12, 128, %s218_s2, [#allocation4]  }
  0xb2   :  { %158 = dma.done.wait [#allocation4], 128  }
  0xb3   :  { %159 = vsyncadd [#allocation4], 4294967168 }
  0xb4   :  { %85 = vsyncpa [#allocation3], 1 }
  0xb5   :  { %86 = vsyncpa [#allocation4], 1 }
  0xb6   :  { %87 = vsyncpa [#allocation5], 1 }

</bundles_post_ra>
